<compile_context>
chip_gen: v7x
topology: tpu7x:2x2x1
jax: 0.10.0
libtpu: 0.0.40
codegen_flags: <defaults>
</compile_context>

<pallas_src>
import functools

import jax
import jax.numpy as jnp
from jax.experimental import pallas as pl
from jax.experimental.pallas import tpu as pltpu


# ----------------------------------------------------------------------------
# Pallas kernel: the whole dense forward (frame-level sigmoid scores).
# ----------------------------------------------------------------------------
def snn_vad_kernel(x_ref,          # (tile_m, D)   bf16   rows grouped by bag
                   w_front_ref,    # (D, Dh+Dg)    bf16   [lsf_w1 | gsf_w]
                   b_front_ref,    # (1, Dh+Dg)    f32    [lsf_b1 | gsf_b]
                   lsf_w2_ref,     # (Dh, D)       bf16
                   lsf_b2_ref,     # (1, D)        f32
                   w1l_ref,        # (D, 512)      bf16   mil_w1[:D]
                   w1g_ref,        # (Dg, 512)     bf16   mil_w1[D:]
                   mil_b1_ref,     # (1, 1, 512)   f32
                   w23_ref,        # (1, 1, 512)   f32    (mil_w2 @ mil_w3)
                   b23_ref,        # (1, 1)        f32    mil_b2 @ mil_w3 + mil_b3
                   out_ref,        # (tile_b, T_pad) f32  lane-dense output
                   *, tile_b, T, Dh, Dg, alpha):
    tile_m = tile_b * T
    t_pad = out_ref.shape[-1]

    x = x_ref[...]                                            # (tile_m, D) bf16

    # ---- fused LSF layer-1 + GSF projection: one (M,D)x(D,Dh+Dg) matmul ----
    front = jnp.dot(x, w_front_ref[...],
                    preferred_element_type=jnp.float32) + b_front_ref[...]

    # ---- LocalSpikingFeature (stand-in): D -> Dh -> D with ReLUs -----------
    h = jnp.maximum(front[:, :Dh], 0.0).astype(jnp.bfloat16)  # (tile_m, Dh)
    f_l = jnp.maximum(
        jnp.dot(h, lsf_w2_ref[...], preferred_element_type=jnp.float32)
        + lsf_b2_ref[...], 0.0)                               # (tile_m, D) f32

    # ---- GlobalSpikingFeature (stand-in): per-bag temporal-mean interaction
    g = front[:, Dh:Dh + Dg].reshape(tile_b, T, Dg)           # (tile_b,T,Dg)
    f_g = jnp.maximum(g + jnp.mean(g, axis=1, keepdims=True), 0.0)
    f_g = f_g.reshape(tile_m, Dg)                             # (tile_m, Dg) f32

    # ---- MIL layer-1 on fused=[f_l|f_g] without materializing the concat ---
    #   fused @ mil_w1 == f_l @ w1_l + f_g @ w1_g
    p = (jnp.dot(f_l.astype(jnp.bfloat16), w1l_ref[...],
                 preferred_element_type=jnp.float32)
         + jnp.dot(f_g.astype(jnp.bfloat16), w1g_ref[...],
                   preferred_element_type=jnp.float32))       # (tile_m, 512)

    # ---- TemporalInteractionModule (stand-in) folded through MIL layer-1 ---
    #   tim = a*fused + (1-a)*mean_t(fused)  =>  tim@w1 = a*P + (1-a)*mean_t(P)
    p3 = p.reshape(tile_b, T, p.shape[-1])
    y1 = jnp.maximum(alpha * p3
                     + (1.0 - alpha) * jnp.mean(p3, axis=1, keepdims=True)
                     + mil_b1_ref[...], 0.0)                  # (tile_b,T,512)

    # ---- MIL layers 2+3 fused: single 512 -> 1 projection as a lane reduce -
    # (dropout layers are identity in eval mode)
    y = jnp.sum(y1 * w23_ref[...], axis=-1) + b23_ref[...]    # (tile_b, T)
    logits = jax.nn.sigmoid(y)

    # ---- lane-dense output block: last dim T_pad (multiple of 128) ---------
    if t_pad > T:
        out_ref[...] = jnp.zeros((tile_b, t_pad), jnp.float32)
        out_ref[:, :T] = logits
    else:
        out_ref[...] = logits


# ----------------------------------------------------------------------------
# Wrapper: wrapper-side (exact) weight algebra + tiled pallas_call.
# ----------------------------------------------------------------------------
def _pick_tile_b(B, T):
    """Largest bag-tile that divides B, keeps blocks (8,128)-friendly and
    targets ~<=256 rows per tile (well inside v7x's 64 MiB VMEM)."""
    target = max(1, 256 // max(T, 1))
    for cand in range(min(B, target), 0, -1):
        if B % cand == 0 and (cand == B or (cand % 8 == 0 and (cand * T) % 8 == 0)):
            return cand
    return B


def snn_vad_forward(f_f, params, *, alpha=0.6):
    """Frame-level sigmoid scores.  f_f: (B, T, D) float32 -> (B, T) float32."""
    B, T, D = f_f.shape
    (lsf_w1, lsf_b1, lsf_w2, lsf_b2, gsf_w, gsf_b,
     mil_w1, mil_b1, mil_w2, mil_b2, mil_w3, mil_b3) = params
    Dh = lsf_w1.shape[1]
    Dg = gsf_w.shape[1]
    hid = mil_w1.shape[1]                      # 512

    tile_b = _pick_tile_b(B, T)
    tile_m = tile_b * T
    t_pad = ((T + 127) // 128) * 128           # lane-dense output width

    bf16 = jnp.bfloat16
    # ---- exact wrapper-side algebra (see kernel header) ---------------------
    w_front = jnp.concatenate([lsf_w1, gsf_w], axis=1).astype(bf16)   # (D,Dh+Dg)
    b_front = jnp.concatenate([lsf_b1, gsf_b], axis=1)                # (1,Dh+Dg)
    w23 = (mil_w2 @ mil_w3).reshape(1, 1, hid)                        # (1,1,512)
    b23 = mil_b2 @ mil_w3 + mil_b3                                    # (1,1)
    w1_l = mil_w1[:D].astype(bf16)                                    # (D,512)
    w1_g = mil_w1[D:].astype(bf16)                                    # (Dg,512)
    b1 = mil_b1.reshape(1, 1, hid)                                    # (1,1,512)
    lsf_w2_bf = lsf_w2.astype(bf16)

    x2 = f_f.reshape(B * T, D).astype(bf16)                           # fold B,T

    kernel = functools.partial(snn_vad_kernel, tile_b=tile_b, T=T,
                               Dh=Dh, Dg=Dg, alpha=alpha)

    def resident(shape):
        return pl.BlockSpec(shape, lambda i, _n=len(shape): (0,) * _n)

    out_padded = pl.pallas_call(
        kernel,
        out_shape=jax.ShapeDtypeStruct((B, t_pad), jnp.float32),
        grid=(B // tile_b,),
        in_specs=[
            pl.BlockSpec((tile_m, D), lambda i: (i, 0)),   # x rows (whole bags)
            resident(w_front.shape),
            resident(b_front.shape),
            resident(lsf_w2_bf.shape),
            resident(lsf_b2.shape),
            resident(w1_l.shape),
            resident(w1_g.shape),
            resident(b1.shape),
            resident(w23.shape),
            resident(b23.shape),
        ],
        out_specs=pl.BlockSpec((tile_b, t_pad), lambda i: (i, 0)),
        compiler_params=pltpu.CompilerParams(
            dimension_semantics=("parallel",)),
    )(x2, w_front, b_front, lsf_w2_bf, lsf_b2, w1_l, w1_g, b1, w23, b23)

    return out_padded[:, :T]


# ----------------------------------------------------------------------------
# MIL.filter: per-bag top-k mean, vectorized (masked fixed-k_max top_k).
# ----------------------------------------------------------------------------
def mil_filter(logits, seq_len):
    if seq_len is None:
        return logits
    B, T = logits.shape
    seq_len = jnp.asarray(seq_len, jnp.int32)
    k = seq_len // 16 + 1                               # per-bag k (k <= L)
    k_max = T // 16 + 1                                 # static upper bound
    frame_idx = jnp.arange(T, dtype=jnp.int32)[None, :]
    masked = jnp.where(frame_idx < seq_len[:, None], logits, -jnp.inf)
    top_vals, _ = jax.lax.top_k(masked, k_max)          # (B, k_max)
    take = jnp.arange(k_max, dtype=jnp.int32)[None, :] < k[:, None]
    return jnp.sum(jnp.where(take, top_vals, 0.0), axis=1) / k.astype(logits.dtype)


# ----------------------------------------------------------------------------
# Pure-JAX f32 reference (unfused), for validating the kernel's algebra.
# ----------------------------------------------------------------------------
def snn_vad_reference(f_f, params, alpha=0.6):
    (lsf_w1, lsf_b1, lsf_w2, lsf_b2, gsf_w, gsf_b,
     mil_w1, mil_b1, mil_w2, mil_b2, mil_w3, mil_b3) = params
    h = jax.nn.relu(f_f @ lsf_w1 + lsf_b1)
    f_l = jax.nn.relu(h @ lsf_w2 + lsf_b2)
    g = f_f @ gsf_w + gsf_b
    f_g = jax.nn.relu(g + jnp.mean(g, axis=1, keepdims=True))
    fused = jnp.concatenate([f_l, f_g], axis=-1)
    tim = alpha * fused + (1.0 - alpha) * jnp.mean(fused, axis=1, keepdims=True)
    y = jax.nn.relu(tim @ mil_w1 + mil_b1)
    y = y @ mil_w2 + mil_b2
    y = y @ mil_w3 + mil_b3
    return jax.nn.sigmoid(y)[..., 0]


# ----------------------------------------------------------------------------
# Deterministic parameter init (PyTorch-style uniform(-1/sqrt(fan_in), .)).
# ----------------------------------------------------------------------------
def init_params(key, feature_size):
    D = feature_size
    Dh = D // 2
    Dg = D // 4
    Df = D + Dg

    def linear(key, fan_in, fan_out):
        kw, kb = jax.random.split(key)
        lim = 1.0 / jnp.sqrt(fan_in)
        w = jax.random.uniform(kw, (fan_in, fan_out), jnp.float32, -lim, lim)
        b = jax.random.uniform(kb, (1, fan_out), jnp.float32, -lim, lim)
        return w, b

    keys = jax.random.split(key, 6)
    lsf_w1, lsf_b1 = linear(keys[0], D, Dh)
    lsf_w2, lsf_b2 = linear(keys[1], Dh, D)
    gsf_w, gsf_b = linear(keys[2], D, Dg)
    mil_w1, mil_b1 = linear(keys[3], Df, 512)
    mil_w2, mil_b2 = linear(keys[4], 512, 32)
    mil_w3, mil_b3 = linear(keys[5], 32, 1)
    return (lsf_w1, lsf_b1, lsf_w2, lsf_b2,
            gsf_w, gsf_b,
            mil_w1, mil_b1, mil_w2, mil_b2, mil_w3, mil_b3)


@jax.jit
def run(f_f, params, seq_len):
    frame_logits = snn_vad_forward(f_f, params)   # (B, T) frame-level scores
    mil_logits = mil_filter(frame_logits, seq_len)  # (B,) bag-level scores
    return frame_logits, mil_logits


if __name__ == "__main__":
    key = jax.random.PRNGKey(0)
    k_x, k_p = jax.random.split(key)

    feature_size = 128          # args.f_feature_size
    B, T = 2, 16                # bags / instances per bag
    seq_len = jnp.array([16, 12], dtype=jnp.int32)

    f_f = jax.random.normal(k_x, (B, T, feature_size), dtype=jnp.float32)
    params = init_params(k_p, feature_size)

    frame_logits, mil_logits = run(f_f, params, seq_len)
    jax.block_until_ready(mil_logits)

    # Validate fused/bf16 kernel against the unfused f32 reference.
    ref = snn_vad_reference(f_f, params)
    err = float(jnp.max(jnp.abs(frame_logits - ref)))

    assert frame_logits.shape == (B, T)
    assert mil_logits.shape == (B,)
    assert err < 5e-2, f"kernel vs reference mismatch: {err}"
    print("KERNEL_OK")
</pallas_src>

<mosaic_0001>
module attributes {stable_mosaic.version = 11 : i64} {
  func.func @snn_vad_kernel(%arg0: i32, %arg1: memref<32x128xbf16, #tpu.memory_space<vmem>>, %arg2: memref<128x96xbf16, #tpu.memory_space<vmem>>, %arg3: memref<1x96xf32, #tpu.memory_space<vmem>>, %arg4: memref<64x128xbf16, #tpu.memory_space<vmem>>, %arg5: memref<1x128xf32, #tpu.memory_space<vmem>>, %arg6: memref<128x512xbf16, #tpu.memory_space<vmem>>, %arg7: memref<32x512xbf16, #tpu.memory_space<vmem>>, %arg8: memref<1x1x512xf32, #tpu.memory_space<vmem>>, %arg9: memref<1x1x512xf32, #tpu.memory_space<vmem>>, %arg10: memref<1x1xf32, #tpu.memory_space<vmem>>, %arg11: memref<2x128xf32, #tpu.memory_space<vmem>>) attributes {dimension_semantics = [#tpu.dimension_semantics<parallel>], iteration_bounds = array<i64: 1>, scalar_prefetch = 0 : i64, scratch_operands = 0 : i64, tpu.core_type = #tpu.core_type<tc>, window_params = [{transform_indices = @transform_0, window_bounds = array<i64: 32, 128>}, {pipeline_mode = #tpu.pipeline_mode<synchronous>, transform_indices = @transform_1, window_bounds = array<i64: 128, 96>}, {pipeline_mode = #tpu.pipeline_mode<synchronous>, transform_indices = @transform_2, window_bounds = array<i64: 1, 96>}, {pipeline_mode = #tpu.pipeline_mode<synchronous>, transform_indices = @transform_3, window_bounds = array<i64: 64, 128>}, {pipeline_mode = #tpu.pipeline_mode<synchronous>, transform_indices = @transform_4, window_bounds = array<i64: 1, 128>}, {pipeline_mode = #tpu.pipeline_mode<synchronous>, transform_indices = @transform_5, window_bounds = array<i64: 128, 512>}, {pipeline_mode = #tpu.pipeline_mode<synchronous>, transform_indices = @transform_6, window_bounds = array<i64: 32, 512>}, {pipeline_mode = #tpu.pipeline_mode<synchronous>, transform_indices = @transform_7, window_bounds = array<i64: 1, 1, 512>}, {pipeline_mode = #tpu.pipeline_mode<synchronous>, transform_indices = @transform_8, window_bounds = array<i64: 1, 1, 512>}, {pipeline_mode = #tpu.pipeline_mode<synchronous>, transform_indices = @transform_9, window_bounds = array<i64: 1, 1>}, {transform_indices = @transform_10, window_bounds = array<i64: 2, 128>}]} {
    %c0 = arith.constant 0 : index
    %c0_0 = arith.constant 0 : index
    %0 = vector.load %arg1[%c0, %c0_0] : memref<32x128xbf16, #tpu.memory_space<vmem>>, vector<32x128xbf16>
    %c0_1 = arith.constant 0 : index
    %c0_2 = arith.constant 0 : index
    %1 = vector.load %arg2[%c0_1, %c0_2] : memref<128x96xbf16, #tpu.memory_space<vmem>>, vector<128x96xbf16>
    %cst = arith.constant dense<0.000000e+00> : vector<32x96xf32>
    %2 = tpu.matmul %0, %1, %cst {dimension_numbers = #tpu.dot_dimension_numbers<[1], [0], [0], [1], [0, 0, 1, 1], [], []>} : vector<32x128xbf16>, vector<128x96xbf16>, vector<32x96xf32> -> vector<32x96xf32>
    %c0_3 = arith.constant 0 : index
    %c0_4 = arith.constant 0 : index
    %3 = vector.load %arg3[%c0_3, %c0_4] : memref<1x96xf32, #tpu.memory_space<vmem>>, vector<1x96xf32>
    %4 = vector.broadcast %3 : vector<1x96xf32> to vector<32x96xf32>
    %5 = arith.addf %2, %4 : vector<32x96xf32>
    %6 = vector.extract_strided_slice %5 {offsets = [0, 0], sizes = [32, 64], strides = [1, 1]} : vector<32x96xf32> to vector<32x64xf32>
    %cst_5 = arith.constant 0.000000e+00 : f32
    %7 = vector.broadcast %cst_5 : f32 to vector<32x64xf32>
    %8 = arith.maximumf %6, %7 : vector<32x64xf32>
    %9 = arith.truncf %8 : vector<32x64xf32> to vector<32x64xbf16>
    %c0_6 = arith.constant 0 : index
    %c0_7 = arith.constant 0 : index
    %10 = vector.load %arg4[%c0_6, %c0_7] : memref<64x128xbf16, #tpu.memory_space<vmem>>, vector<64x128xbf16>
    %cst_8 = arith.constant dense<0.000000e+00> : vector<32x128xf32>
    %11 = tpu.matmul %9, %10, %cst_8 {dimension_numbers = #tpu.dot_dimension_numbers<[1], [0], [0], [1], [0, 0, 1, 1], [], []>} : vector<32x64xbf16>, vector<64x128xbf16>, vector<32x128xf32> -> vector<32x128xf32>
    %c0_9 = arith.constant 0 : index
    %c0_10 = arith.constant 0 : index
    %12 = vector.load %arg5[%c0_9, %c0_10] : memref<1x128xf32, #tpu.memory_space<vmem>>, vector<1x128xf32>
    %13 = vector.broadcast %12 : vector<1x128xf32> to vector<32x128xf32>
    %14 = arith.addf %11, %13 : vector<32x128xf32>
    %cst_11 = arith.constant 0.000000e+00 : f32
    %15 = vector.broadcast %cst_11 : f32 to vector<32x128xf32>
    %16 = arith.maximumf %14, %15 : vector<32x128xf32>
    %17 = vector.extract_strided_slice %5 {offsets = [0, 64], sizes = [32, 32], strides = [1, 1]} : vector<32x96xf32> to vector<32x32xf32>
    %18 = vector.shape_cast %17 : vector<32x32xf32> to vector<2x16x32xf32>
    %cst_12 = arith.constant dense<0.000000e+00> : vector<2x32xf32>
    %19 = vector.multi_reduction <add>, %18, %cst_12 [1] : vector<2x16x32xf32> to vector<2x32xf32>
    %20 = vector.shape_cast %19 : vector<2x32xf32> to vector<2x1x32xf32>
    %cst_13 = arith.constant 1.600000e+01 : f32
    %21 = vector.broadcast %cst_13 : f32 to vector<2x1x32xf32>
    %22 = arith.divf %20, %21 : vector<2x1x32xf32>
    %23 = vector.broadcast %22 : vector<2x1x32xf32> to vector<2x16x32xf32>
    %24 = arith.addf %18, %23 : vector<2x16x32xf32>
    %cst_14 = arith.constant 0.000000e+00 : f32
    %25 = vector.broadcast %cst_14 : f32 to vector<2x16x32xf32>
    %26 = arith.maximumf %24, %25 : vector<2x16x32xf32>
    %27 = vector.shape_cast %26 : vector<2x16x32xf32> to vector<32x32xf32>
    %28 = arith.truncf %16 : vector<32x128xf32> to vector<32x128xbf16>
    %c0_15 = arith.constant 0 : index
    %c0_16 = arith.constant 0 : index
    %29 = vector.load %arg6[%c0_15, %c0_16] : memref<128x512xbf16, #tpu.memory_space<vmem>>, vector<128x512xbf16>
    %cst_17 = arith.constant dense<0.000000e+00> : vector<32x512xf32>
    %30 = tpu.matmul %28, %29, %cst_17 {dimension_numbers = #tpu.dot_dimension_numbers<[1], [0], [0], [1], [0, 0, 1, 1], [], []>} : vector<32x128xbf16>, vector<128x512xbf16>, vector<32x512xf32> -> vector<32x512xf32>
    %31 = arith.truncf %27 : vector<32x32xf32> to vector<32x32xbf16>
    %c0_18 = arith.constant 0 : index
    %c0_19 = arith.constant 0 : index
    %32 = vector.load %arg7[%c0_18, %c0_19] : memref<32x512xbf16, #tpu.memory_space<vmem>>, vector<32x512xbf16>
    %cst_20 = arith.constant dense<0.000000e+00> : vector<32x512xf32>
    %33 = tpu.matmul %31, %32, %cst_20 {dimension_numbers = #tpu.dot_dimension_numbers<[1], [0], [0], [1], [0, 0, 1, 1], [], []>} : vector<32x32xbf16>, vector<32x512xbf16>, vector<32x512xf32> -> vector<32x512xf32>
    %34 = arith.addf %30, %33 : vector<32x512xf32>
    %35 = vector.shape_cast %34 : vector<32x512xf32> to vector<2x16x512xf32>
    %cst_21 = arith.constant 6.000000e-01 : f32
    %36 = vector.broadcast %cst_21 : f32 to vector<2x16x512xf32>
    %37 = arith.mulf %36, %35 : vector<2x16x512xf32>
    %cst_22 = arith.constant dense<0.000000e+00> : vector<2x512xf32>
    %38 = vector.multi_reduction <add>, %35, %cst_22 [1] : vector<2x16x512xf32> to vector<2x512xf32>
    %39 = vector.shape_cast %38 : vector<2x512xf32> to vector<2x1x512xf32>
    %cst_23 = arith.constant 1.600000e+01 : f32
    %40 = vector.broadcast %cst_23 : f32 to vector<2x1x512xf32>
    %41 = arith.divf %39, %40 : vector<2x1x512xf32>
    %cst_24 = arith.constant 4.000000e-01 : f32
    %42 = vector.broadcast %cst_24 : f32 to vector<2x1x512xf32>
    %43 = arith.mulf %42, %41 : vector<2x1x512xf32>
    %44 = vector.broadcast %43 : vector<2x1x512xf32> to vector<2x16x512xf32>
    %45 = arith.addf %37, %44 : vector<2x16x512xf32>
    %c0_25 = arith.constant 0 : index
    %c0_26 = arith.constant 0 : index
    %c0_27 = arith.constant 0 : index
    %46 = vector.load %arg8[%c0_25, %c0_26, %c0_27] : memref<1x1x512xf32, #tpu.memory_space<vmem>>, vector<1x1x512xf32>
    %47 = vector.broadcast %46 : vector<1x1x512xf32> to vector<2x16x512xf32>
    %48 = arith.addf %45, %47 : vector<2x16x512xf32>
    %cst_28 = arith.constant 0.000000e+00 : f32
    %49 = vector.broadcast %cst_28 : f32 to vector<2x16x512xf32>
    %50 = arith.maximumf %48, %49 : vector<2x16x512xf32>
    %c0_29 = arith.constant 0 : index
    %c0_30 = arith.constant 0 : index
    %c0_31 = arith.constant 0 : index
    %51 = vector.load %arg9[%c0_29, %c0_30, %c0_31] : memref<1x1x512xf32, #tpu.memory_space<vmem>>, vector<1x1x512xf32>
    %52 = vector.broadcast %51 : vector<1x1x512xf32> to vector<2x16x512xf32>
    %53 = arith.mulf %50, %52 : vector<2x16x512xf32>
    %cst_32 = arith.constant dense<0.000000e+00> : vector<2x16xf32>
    %54 = vector.multi_reduction <add>, %53, %cst_32 [2] : vector<2x16x512xf32> to vector<2x16xf32>
    %c0_33 = arith.constant 0 : index
    %c0_34 = arith.constant 0 : index
    %55 = vector.load %arg10[%c0_33, %c0_34] : memref<1x1xf32, #tpu.memory_space<vmem>>, vector<1x1xf32>
    %56 = vector.broadcast %55 : vector<1x1xf32> to vector<2x16xf32>
    %57 = arith.addf %54, %56 : vector<2x16xf32>
    %58 = arith.negf %57 : vector<2x16xf32>
    %59 = math.exp %58 : vector<2x16xf32>
    %cst_35 = arith.constant 1.000000e+00 : f32
    %60 = vector.broadcast %cst_35 : f32 to vector<2x16xf32>
    %61 = arith.addf %60, %59 : vector<2x16xf32>
    %62 = arith.divf %60, %61 : vector<2x16xf32>
    %cst_36 = arith.constant 0.000000e+00 : f32
    %63 = vector.broadcast %cst_36 : f32 to vector<2x128xf32>
    %c0_37 = arith.constant 0 : index
    %c0_38 = arith.constant 0 : index
    %64 = vector.load %arg11[%c0_37, %c0_38] : memref<2x128xf32, #tpu.memory_space<vmem>>, vector<2x128xf32>
    tpu.vector_store %arg11[%c0_37, %c0_38], %63 {strides = array<i32>} : memref<2x128xf32, #tpu.memory_space<vmem>>, vector<2x128xf32>,
    %c0_39 = arith.constant 0 : index
    %c0_40 = arith.constant 0 : index
    %65 = vector.load %arg11[%c0_39, %c0_40] : memref<2x128xf32, #tpu.memory_space<vmem>>, vector<2x16xf32>
    tpu.vector_store %arg11[%c0_39, %c0_40], %62 {strides = array<i32>} : memref<2x128xf32, #tpu.memory_space<vmem>>, vector<2x16xf32>,
    return
  }
  func.func @transform_0(%arg0: i32) -> (i32, i32) {
    %c0_i32 = arith.constant 0 : i32
    %c0_i32_0 = arith.constant 0 : i32
    return %arg0, %c0_i32 : i32, i32
  }
  func.func @transform_1(%arg0: i32) -> (i32, i32) {
    %c0_i32 = arith.constant 0 : i32
    %c0_i32_0 = arith.constant 0 : i32
    %c0_i32_1 = arith.constant 0 : i32
    return %c0_i32, %c0_i32_0 : i32, i32
  }
  func.func @transform_2(%arg0: i32) -> (i32, i32) {
    %c0_i32 = arith.constant 0 : i32
    %c0_i32_0 = arith.constant 0 : i32
    %c0_i32_1 = arith.constant 0 : i32
    return %c0_i32, %c0_i32_0 : i32, i32
  }
  func.func @transform_3(%arg0: i32) -> (i32, i32) {
    %c0_i32 = arith.constant 0 : i32
    %c0_i32_0 = arith.constant 0 : i32
    %c0_i32_1 = arith.constant 0 : i32
    return %c0_i32, %c0_i32_0 : i32, i32
  }
  func.func @transform_4(%arg0: i32) -> (i32, i32) {
    %c0_i32 = arith.constant 0 : i32
    %c0_i32_0 = arith.constant 0 : i32
    %c0_i32_1 = arith.constant 0 : i32
    return %c0_i32, %c0_i32_0 : i32, i32
  }
  func.func @transform_5(%arg0: i32) -> (i32, i32) {
    %c0_i32 = arith.constant 0 : i32
    %c0_i32_0 = arith.constant 0 : i32
    %c0_i32_1 = arith.constant 0 : i32
    return %c0_i32, %c0_i32_0 : i32, i32
  }
  func.func @transform_6(%arg0: i32) -> (i32, i32) {
    %c0_i32 = arith.constant 0 : i32
    %c0_i32_0 = arith.constant 0 : i32
    %c0_i32_1 = arith.constant 0 : i32
    return %c0_i32, %c0_i32_0 : i32, i32
  }
  func.func @transform_7(%arg0: i32) -> (i32, i32, i32) {
    %c0_i32 = arith.constant 0 : i32
    %c0_i32_0 = arith.constant 0 : i32
    %c0_i32_1 = arith.constant 0 : i32
    %c0_i32_2 = arith.constant 0 : i32
    return %c0_i32, %c0_i32_0, %c0_i32_1 : i32, i32, i32
  }
  func.func @transform_8(%arg0: i32) -> (i32, i32, i32) {
    %c0_i32 = arith.constant 0 : i32
    %c0_i32_0 = arith.constant 0 : i32
    %c0_i32_1 = arith.constant 0 : i32
    %c0_i32_2 = arith.constant 0 : i32
    return %c0_i32, %c0_i32_0, %c0_i32_1 : i32, i32, i32
  }
  func.func @transform_9(%arg0: i32) -> (i32, i32) {
    %c0_i32 = arith.constant 0 : i32
    %c0_i32_0 = arith.constant 0 : i32
    %c0_i32_1 = arith.constant 0 : i32
    return %c0_i32, %c0_i32_0 : i32, i32
  }
  func.func @transform_10(%arg0: i32) -> (i32, i32) {
    %c0_i32 = arith.constant 0 : i32
    %c0_i32_0 = arith.constant 0 : i32
    return %arg0, %c0_i32 : i32, i32
  }
}

</mosaic_0001>

<bundles_post_ra>
// kernel: run.1
= control target key start
LH: loop header
LB: loop body
LE: loop exit
PB: predicated region body
PF: predicated region fallthrough
CT: control target
= control target key end

     0   :  { %v1294_v14 = vmov 0   ;;  %vm279_vm0 = vcmask 785920   ;;  %vm219_vm1 = vcmask 523264   ;;  %s1295_s18 = smov 64   ;;  %vm399_vm2 = vcmask 261120   ;;  %s1652_s1 = inlined_call_operand.vmem [shape: bf16[128,96], index: 1, kind: input, shape index: {}]   ;;  %s1653_s0 = inlined_call_operand.vmem [shape: bf16[32,128], index: 0, kind: input, shape index: {}]   ;;  %s1654_s3 = inlined_call_operand.vmem [shape: bf16[64,128], index: 3, kind: input, shape index: {}]   ;;  %s1655_s6 = inlined_call_operand.vmem [shape: bf16[32,512], index: 6, kind: input, shape index: {}]   ;;  %s1656_s2 = inlined_call_operand.vmem [shape: f32[1,96], index: 2, kind: input, shape index: {}]   ;;  %s1657_s5 = inlined_call_operand.vmem [shape: bf16[128,512], index: 5, kind: input, shape index: {}]   ;;  %s1658_s4 = inlined_call_operand.vmem [shape: f32[1,128], index: 4, kind: input, shape index: {}]   ;;  %s1659_s9 = inlined_call_operand.<no memory space> [shape: f32[1,1], index: 9, kind: input, shape index: {}]   ;;  %s1660_s7 = inlined_call_operand.vmem [shape: f32[1,1,512], index: 7, kind: input, shape index: {}]   ;;  %s1661_s8 = inlined_call_operand.vmem [shape: f32[1,1,512], index: 8, kind: input, shape index: {}]   ;;  %s1662_s10 = inlined_call_operand.vmem [shape: f32[2,128], index: 10, kind: output, shape index: {}]  }
   0x1   :  { %v1204_v0 = vld [vmem:[%s1652_s1] sm:$0xff]   ;;  %v1205_v1 = vld [vmem:[%s1652_s1 + $0x8] sm:$0xff]   ;;  %v1206_v2 = vld [vmem:[%s1652_s1 + $0x10] sm:$0xff]   ;;  %1202 = vset.pattern.permute.xlu1 %v1294_v14  ;;  %1203 = vset.pattern.permute.xlu0 %v1294_v14  ;;  %vm1048_vm3 = vcmask 130112   ;;  %vm1059_vm4 = vcmask 1041409   ;;  %vm1062_vm5 = vcmask 123904  }
   0x2   :  { %1151 = vmatprep.subr.bf16.mxu0 %v1204_v0  ;;  %v1207_v3 = vld [vmem:[%s1652_s1 + $0x18] sm:$0xff]   ;;  %v1212_v4 = vld [vmem:[%s1653_s0] sm:$0xff]   ;;  %v1215_v7 = vld [vmem:[%s1654_s3 + $0x8] sm:$0xff]  }
   0x3   :  { %1152 = vmatpush3.bf16.msra.mxu0 %v1204_v0  ;;  %v1208_v5 = vld [vmem:[%s1652_s1 + $0x20] sm:$0xff]   ;;  %1167 = vmatprep.mubr.bf16.mxu0 %v1212_v4  ;;  %v1209_v8 = vld [vmem:[%s1652_s1 + $0x28] sm:$0xff]   ;;  %v1210_v9 = vld [vmem:[%s1652_s1 + $0x30] sm:$0xff]  }
   0x4   :  { %1153 = vmatprep.subr.bf16.mxu0 %v1205_v1  ;;  %v1214_v6 = vld [vmem:[%s1654_s3] sm:$0xff]   ;;  %v1211_v10 = vld [vmem:[%s1652_s1 + $0x38] sm:$0xff]   ;;  %v1213_v11 = vld [vmem:[%s1653_s0 + $0x8] sm:$0xff]  }
   0x5   :  { %1171 = vmatprep.subr.bf16.mxu1 %v1214_v6  ;;  %v1216_v12 = vld [vmem:[%s1654_s3 + $0x10] sm:$0xff]   ;;  %v1217_v13 = vld [vmem:[%s1654_s3 + $0x18] sm:$0xff]   ;;  %v1068_v20 = vld [vmem:[%s1656_s2] ss:$0 sm:$0xff] }
   0x6   :  { %1172 = vmatpush3.bf16.msra.mxu1 %v1214_v6  ;;  %v1220_v15 = vld [vmem:[%s1655_s6 + $0x4] ss:$16 sps:$4 sm:$0xff]   ;;  %v1221_v16 = vld [vmem:[%s1655_s6 + $0x8] ss:$16 sps:$4 sm:$0xff]   ;;  %v1223_v17 = vld [vmem:[%s1655_s6 + $0xc] ss:$16 sps:$4 sm:$0xff]  }
   0x7   :  { %1154 = vmatpush3.bf16.msra.mxu0 %v1205_v1  ;;  %1173 = vmatprep.subr.bf16.mxu1 %v1215_v7  ;;  %v1227_v18 = vld [vmem:[%s1655_s6 + $0x28] ss:$16 sps:$4 sm:$0xff]   ;;  %v1229_v19 = vld [vmem:[%s1655_s6 + $0x2c] ss:$16 sps:$4 sm:$0xff]   ;;  %v1218_v42 = vld [vmem:[%s1655_s6] ss:$16 sps:$4 sm:$0xff]  }
   0x8   :  { %1155 = vmatprep.subr.bf16.mxu0 %v1206_v2  ;;  %v1226_v44 = vld [vmem:[%s1655_s6 + $0x24] ss:$16 sps:$4 sm:$0xff]   ;;  %v1224_v48 = vld [vmem:[%s1655_s6 + $0x20] ss:$16 sps:$4 sm:$0xff]  }
   0x9   :  { %v1230_v6 = vld [vmem:[%s1657_s5] ss:$16 sps:$4 sm:$0xff]  }
   0xa   :  { %1174 = vmatpush3.bf16.msra.mxu1 %v1215_v7  ;;  %v1233_v7 = vld [vmem:[%s1657_s5 + $0x8] ss:$16 sps:$4 sm:$0xff]  }
   0xb   :  { %1156 = vmatpush3.bf16.msra.mxu0 %v1206_v2  ;;  %1175 = vmatprep.subr.bf16.mxu1 %v1216_v12 }
   0xc   :  { %1157 = vmatprep.subr.bf16.mxu0 %v1207_v3 }
   0xe   :  { %1176 = vmatpush3.bf16.msra.mxu1 %v1216_v12  ;;  %v1239_v12 = vld [vmem:[%s1657_s5 + $0x28] ss:$16 sps:$4 sm:$0xff]  }
   0xf   :  { %1158 = vmatpush3.bf16.msra.mxu0 %v1207_v3  ;;  %1177 = vmatprep.subr.bf16.mxu1 %v1217_v13  ;;  %v1232_v3 = vld [vmem:[%s1657_s5 + $0x4] ss:$16 sps:$4 sm:$0xff]  }
  0x10   :  { %1159 = vmatprep.subr.bf16.mxu0 %v1208_v5 }
  0x12   :  { %1178 = vmatpush3.bf16.msra.mxu1 %v1217_v13  ;;  %v1244_v13 = vld [vmem:[%s1657_s5 + $0x44] ss:$16 sps:$4 sm:$0xff]  }
  0x13   :  { %1160 = vmatpush3.bf16.msra.mxu0 %v1208_v5  ;;  %406 = vmatprep.subr.bf16.mxu1 %v1220_v15  ;;  %v1235_v5 = vld [vmem:[%s1657_s5 + $0xc] ss:$16 sps:$4 sm:$0xff]  }
  0x14   :  { %1161 = vmatprep.subr.bf16.mxu0 %v1209_v8  ;;  %v1247_v15 = vld [vmem:[%s1657_s5 + $0x4c] ss:$16 sps:$4 sm:$0xff]  }
  0x17   :  { %1162 = vmatpush3.bf16.msra.mxu0 %v1209_v8 }
  0x18   :  { %1163 = vmatprep.subr.bf16.mxu0 %v1210_v9 }
  0x1b   :  { %1164 = vmatpush3.bf16.msra.mxu0 %v1210_v9  ;;  %v1238_v9 = vld [vmem:[%s1657_s5 + $0x24] ss:$16 sps:$4 sm:$0xff]  }
  0x1c   :  { %1165 = vmatprep.subr.bf16.mxu0 %v1211_v10 }
  0x1f   :  { %1166 = vmatpush3.bf16.msra.mxu0 %v1211_v10  ;;  %v1241_v10 = vld [vmem:[%s1657_s5 + $0x2c] ss:$16 sps:$4 sm:$0xff]  }
  0x20   :  { %459 = vmatprep.subr.bf16.mxu0 %v1223_v17  ;;  %v1245_v17 = vld [vmem:[%s1657_s5 + $0x48] ss:$16 sps:$4 sm:$0xff]  }
  0x22   :  { %1168 = vmatmul.mubr.bf16.vlgmr.msra.gmra.mrb[0].mxu0 %v1213_v11  ;;  %v1236_v11 = vld [vmem:[%s1657_s5 + $0x20] ss:$16 sps:$4 sm:$0xff]  }
  0x23   :  { %491 = vmatprep.mubr.bf16.mxu0 %v1294_v14  ;;  %460 = vmatpush1.bf16.msra.mxu0 %v1221_v16  ;;  %v1242_v16 = vld [vmem:[%s1657_s5 + $0x40] ss:$16 sps:$4 sm:$0xff]  }
  0x24   :  { %461 = vmatprep.subr.bf16.mxu0 %v1229_v19  ;;  %v1250_v19 = vld [vmem:[%s1657_s5 + $0x64] ss:$16 sps:$4 sm:$0xff]  }
  0x27   :  { %462 = vmatpush1.bf16.msra.mxu0 %v1227_v18 }
  0x28   :  { %725 = vmatprep.subr.bf16.mxu0 %v1235_v5 }
  0xf5   :  { %v1169_v21 = vpop.f32.mrb[0].mxu0 }
  0xf6   :  { %v168_v22 = vadd.f32 %v1169_v21, %v1068_v20  ;;  %v159_v23 = vpop.f32.mrb[1].mxu0  ;;  %v1248_v21 = vld [vmem:[%s1657_s5 + $0x60] ss:$16 sps:$4 sm:$0xff]  }
  0xf7   :  { %v160_v24 = vadd.f32 %v1068_v20, %v159_v23  ;;  %v1170_v25 = vpop.f32.mrb[2].mxu0  ;;  %v1256_v23 = vld [vmem:[%s1657_s5 + $0x84] ss:$16 sps:$4 sm:$0xff]  }
  0xf8   :  { %v171_v26 = vadd.f32 %v1170_v25, %v1068_v20  ;;  %v162_v27 = vpop.f32.mrb[3].mxu0  ;;  %v176_v28 = vmax.f32 %v168_v22, 0.0  ;;  %v289_v30 = vsel %vm279_vm0, %v168_v22, 0.0  ;;  %v1254_v25 = vld [vmem:[%s1657_s5 + $0x80] ss:$16 sps:$4 sm:$0xff]  }
  0xf9   :  { %v163_v29 = vadd.f32 %v1068_v20, %v162_v27  ;;  %v280_v31 = vsel %vm279_vm0, %v160_v24, 0.0  ;;  %v174_v36 = vmax.f32 %v160_v24, 0.0  ;;  %v1253_v20 = vld [vmem:[%s1657_s5 + $0x6c] ss:$16 sps:$4 sm:$0xff]   ;;  %v1262_v27 = vld [vmem:[%s1657_s5 + $0xa4] ss:$16 sps:$4 sm:$0xff]  }
  0xfa   :  { %v177_v32 = vmax.f32 %v171_v26, 0.0  ;;  %v290_v33 = vsel %vm279_vm0, %v171_v26, 0.0 }
  0xfb   :  { %v291_v34 = vadd.f32 %v290_v33, %v289_v30  ;;  %v281_v35 = vsel %vm279_vm0, %v163_v29, 0.0  ;;  %v175_v37 = vmax.f32 %v163_v29, 0.0  ;;  %v1263_v30 = vld [vmem:[%s1657_s5 + $0xa8] ss:$16 sps:$4 sm:$0xff]   ;;  %v1266_v33 = vld [vmem:[%s1657_s5 + $0xc0] ss:$16 sps:$4 sm:$0xff]  }
  0xfc   :  { %v179_v38 = vpack.c.bf16 %v177_v32, %v176_v28  ;;  %v282_v39 = vadd.f32 %v281_v35, %v280_v31  ;;  %v1265_v28 = vld [vmem:[%s1657_s5 + $0xac] ss:$16 sps:$4 sm:$0xff]   ;;  %v1268_v31 = vld [vmem:[%s1657_s5 + $0xc4] ss:$16 sps:$4 sm:$0xff]  }
  0xfd   :  { %v292_v40 = vrot.slane %v291_v34, 4  ;;  %v178_v41 = vpack.c.bf16 %v175_v37, %v174_v36  ;;  %v1271_v32 = vld [vmem:[%s1657_s5 + $0xcc] ss:$16 sps:$4 sm:$0xff]   ;;  %v1274_v35 = vld [vmem:[%s1657_s5 + $0xe4] ss:$16 sps:$4 sm:$0xff]  }
  0xfe   :  { %v283_v43 = vrot.slane %v282_v39, 4  ;;  %v1277_v36 = vld [vmem:[%s1657_s5 + $0xec] ss:$16 sps:$4 sm:$0xff]   ;;  %v1272_v37 = vld [vmem:[%s1657_s5 + $0xe0] ss:$16 sps:$4 sm:$0xff]  }
  0xff   :  { %v293_v45 = vadd.f32 %v292_v40, %v291_v34  ;;  %1179 = vmatprep.mubr.msk.bf16.mxu1 %vm219_vm1, %v178_v41  ;;  %v1269_v34 = vld [vmem:[%s1657_s5 + $0xc8] ss:$16 sps:$4 sm:$0xff]  }
 0x100   :  { %v284_v46 = vadd.f32 %v283_v43, %v282_v39  ;;  %1180 = vmatmul.mubr.msk.bf16.vlgmr.msra.gmra.mrb[0].mxu1 %vm219_vm1, %v179_v38  ;;  %v1275_v38 = vld [vmem:[%s1657_s5 + $0xe8] ss:$16 sps:$4 sm:$0xff]   ;;  %v1079_v39 = vld [vmem:[%s1658_s4] ss:$0 sm:$0xff] }
 0x101   :  { %v294_v47 = vrot.slane %v293_v45, 2  ;;  %407 = vmatpush1.bf16.msra.mxu1 %v1218_v42  ;;  %438 = vmatprep.mubr.bf16.mxu1 %v1294_v14 }
 0x102   :  { %v285_v49 = vrot.slane %v284_v46, 2  ;;  %408 = vmatprep.subr.bf16.mxu1 %v1226_v44 }
 0x103   :  { %v295_v50 = vadd.f32 %v294_v47, %v293_v45 }
 0x104   :  { %v286_v51 = vadd.f32 %v285_v49, %v284_v46 }
 0x105   :  { %v296_v52 = vrot.slane %v295_v50, 1  ;;  %409 = vmatpush1.bf16.msra.mxu1 %v1224_v48 }
 0x106   :  { %v287_v53 = vrot.slane %v286_v51, 1  ;;  %672 = vmatprep.subr.bf16.mxu1 %v1232_v3 }
 0x107   :  { %v297_v54 = vadd.f32 %v296_v52, %v295_v50 }
 0x108   :  { %v288_v55 = vadd.f32 %v287_v53, %v286_v51 }
 0x109   :  { %v300_v56 = vmul.f32 0.0625, %v297_v54  ;;  %v15_v54 = vstv %s1659_s9 }
 0x10a   :  { %v299_v57 = vmul.f32 0.0625, %v288_v55  ;;  %16 = vst [vmem:[#allocation2] sm:$0x1] %v15_v54  ;;  %v884_v55 = vlaneseq }
 0x10b   :  { %v304_v58 = vadd.f32 %v300_v56, %v171_v26  ;;  %v303_v59 = vadd.f32 %v300_v56, %v168_v22  ;;  %v1251_v22 = vld [vmem:[%s1657_s5 + $0x68] ss:$16 sps:$4 sm:$0xff]  }
 0x10c   :  { %v301_v60 = vadd.f32 %v299_v57, %v160_v24  ;;  %v302_v61 = vadd.f32 %v299_v57, %v163_v29  ;;  %v1259_v24 = vld [vmem:[%s1657_s5 + $0x8c] ss:$16 sps:$4 sm:$0xff]   ;;  %v1257_v26 = vld [vmem:[%s1657_s5 + $0x88] ss:$16 sps:$4 sm:$0xff]   ;;  %v1260_v29 = vld [vmem:[%s1657_s5 + $0xa0] ss:$16 sps:$4 sm:$0xff]  }
 0x10d   :  { %v308_v62 = vmax.f32 %v304_v58, 0.0  ;;  %v307_v63 = vmax.f32 %v303_v59, 0.0  ;;  %v1538_v56 = vshrl.u32 %v884_v55, 7  ;;  %v882_v59 = vld [vmem:[%s1660_s7] sm:$0xf] }
 0x10e   :  { %v305_v0 = vmax.f32 %v301_v60, 0.0  ;;  %v306_v1 = vmax.f32 %v302_v61, 0.0 }
 0x10f   :  { %v344_v2 = vpack.c.bf16 %v308_v62, %v307_v63  ;;  %v886_v57 = vsub.s32 0, %v1538_v56  ;;  %v894_v58 = vsub.s32 2, %v1538_v56  ;;  %v898_v60 = vsub.s32 3, %v1538_v56 }
 0x110   :  { %v343_v4 = vpack.c.bf16 %v306_v1, %v305_v0  ;;  %v936_v1 = vld [vmem:[%s1661_s8] sm:$0xf] }
 0x111   :  { %v1550_v3 = vrot.slane %v882_v59, %v886_v57  ;;  %v1552_v5 = vrot.slane %v882_v59, %v894_v58 }
 0x112   :  { %355 = vrot.lane.b32.xlu0 %v343_v4, %s1295_s18 }
 0x116   :  { %357 = vrot.lane.b32.xlu0 %v344_v2, %s1295_s18 }
 0x184   :  { %v356_v8 = vpop.permute.xlu0 %355 }
 0x185   :  { %1094 = vmatmul.mubr.msk.bf16.vlgmr.msra.gmra.mrb[4].mxu1 %vm399_vm2, %v356_v8  ;;  %1096 = vmatmul.mubr.msk.bf16.vlgmr.msra.gmra.mrb[4].mxu0 %vm399_vm2, %v356_v8 }
 0x186   :  { %448 = vmatprep.mubr.bf16.mxu1 %v1294_v14  ;;  %501 = vmatprep.mubr.bf16.mxu0 %v1294_v14 }
 0x187   :  { %673 = vmatpush1.bf16.msra.mxu1 %v1230_v6  ;;  %726 = vmatpush1.bf16.msra.mxu0 %v1233_v7 }
 0x188   :  { %674 = vmatprep.subr.bf16.mxu1 %v1238_v9  ;;  %727 = vmatprep.subr.bf16.mxu0 %v1241_v10  ;;  %v358_v18 = vpop.permute.xlu0 %357 }
 0x18b   :  { %675 = vmatpush1.bf16.msra.mxu1 %v1236_v11  ;;  %728 = vmatpush1.bf16.msra.mxu0 %v1239_v12  ;;  %v1556_v11 = vrot.slane %v882_v59, %v898_v60 }
 0x18c   :  { %676 = vmatprep.subr.bf16.mxu1 %v1244_v13  ;;  %729 = vmatprep.subr.bf16.mxu0 %v1247_v15 }
 0x18d   :  { %1095 = vmatmul.mubr.msk.bf16.gmra.mrb[8].mxu1 %vm399_vm2, %v358_v18  ;;  %1097 = vmatmul.mubr.msk.bf16.gmra.mrb[8].mxu0 %vm399_vm2, %v358_v18 }
 0x18e   :  { %704 = vmatprep.mubr.bf16.mxu1 %v1294_v14  ;;  %757 = vmatprep.mubr.bf16.mxu0 %v1294_v14 }
 0x18f   :  { %677 = vmatpush1.bf16.msra.mxu1 %v1242_v16  ;;  %730 = vmatpush1.bf16.msra.mxu0 %v1245_v17  ;;  %v1560_v16 = vrot.slane %v936_v1, %v886_v57 }
 0x190   :  { %678 = vmatprep.subr.bf16.mxu1 %v1250_v19  ;;  %731 = vmatprep.subr.bf16.mxu0 %v1253_v20  ;;  %v1564_v20 = vrot.slane %v936_v1, %v894_v58 }
 0x193   :  { %679 = vmatpush1.bf16.msra.mxu1 %v1248_v21  ;;  %732 = vmatpush1.bf16.msra.mxu0 %v1251_v22 }
 0x194   :  { %680 = vmatprep.subr.bf16.mxu1 %v1256_v23  ;;  %733 = vmatprep.subr.bf16.mxu0 %v1259_v24 }
 0x197   :  { %681 = vmatpush1.bf16.msra.mxu1 %v1254_v25  ;;  %734 = vmatpush1.bf16.msra.mxu0 %v1257_v26 }
 0x198   :  { %682 = vmatprep.subr.bf16.mxu1 %v1262_v27  ;;  %735 = vmatprep.subr.bf16.mxu0 %v1265_v28 }
 0x19b   :  { %683 = vmatpush1.bf16.msra.mxu1 %v1260_v29  ;;  %736 = vmatpush1.bf16.msra.mxu0 %v1263_v30 }
 0x19c   :  { %684 = vmatprep.subr.bf16.mxu1 %v1268_v31  ;;  %737 = vmatprep.subr.bf16.mxu0 %v1271_v32 }
 0x19f   :  { %685 = vmatpush1.bf16.msra.mxu1 %v1266_v33  ;;  %738 = vmatpush1.bf16.msra.mxu0 %v1269_v34 }
 0x1a0   :  { %686 = vmatprep.subr.bf16.mxu1 %v1274_v35  ;;  %739 = vmatprep.subr.bf16.mxu0 %v1277_v36 }
 0x1a3   :  { %687 = vmatpush1.bf16.msra.mxu1 %v1272_v37  ;;  %740 = vmatpush1.bf16.msra.mxu0 %v1275_v38 }
 0x1d3   :  { %v1181_v40 = vpop.f32.mrb[0].mxu1 }
 0x1d4   :  { %v269_v41 = vadd.f32 %v1181_v40, %v1079_v39  ;;  %v260_v42 = vpop.f32.mrb[1].mxu1 }
 0x1d5   :  { %v261_v43 = vadd.f32 %v1079_v39, %v260_v42  ;;  %v1182_v44 = vpop.f32.mrb[2].mxu1 }
 0x1d6   :  { %v272_v45 = vadd.f32 %v1182_v44, %v1079_v39  ;;  %v263_v46 = vpop.f32.mrb[3].mxu1  ;;  %v277_v48 = vmax.f32 %v269_v41, 0.0  ;;  %v1582_v44 = vrot.slane %v936_v1, %v898_v60 }
 0x1d7   :  { %v264_v47 = vadd.f32 %v1079_v39, %v263_v46  ;;  %v275_v50 = vmax.f32 %v261_v43, 0.0 }
 0x1d8   :  { %v278_v49 = vmax.f32 %v272_v45, 0.0 }
 0x1d9   :  { %v276_v51 = vmax.f32 %v264_v47, 0.0 }
 0x1da   :  { %v310_v52 = vpack.c.bf16 %v278_v49, %v277_v48 }
 0x1db   :  { %v309_v53 = vpack.c.bf16 %v276_v51, %v275_v50 }
 0x1dd   :  { %705 = vmatmul.mubr.bf16.vlgmr.msra.gmra.mrb[4].mxu1 %v309_v53  ;;  %758 = vmatmul.mubr.bf16.vlgmr.msra.gmra.mrb[4].mxu0 %v309_v53 }
 0x1de   :  { %714 = vmatprep.mubr.bf16.mxu1 %v1294_v14  ;;  %767 = vmatprep.mubr.bf16.mxu0 %v1294_v14  ;;  %v890_v14 = vsub.s32 1, %v1538_v56 }
 0x1e0   :  { %v1554_v9 = vrot.slane %v882_v59, %v890_v14  ;;  %v1558_v15 = vrot.slane %v936_v1, %v890_v14 }
 0x1e5   :  { %715 = vmatmul.mubr.bf16.gmra.mrb[8].mxu1 %v310_v52  ;;  %768 = vmatmul.mubr.bf16.gmra.mrb[8].mxu0 %v310_v52 }
 0x2b0   :  { %v706_v61 = vpop.f32.mrb[4].mxu1  ;;  %v759_v62 = vpop.f32.mrb[4].mxu0 }
 0x2b1   :  { %v708_v63 = vpop.f32.mrb[5].mxu1  ;;  %v761_v0 = vpop.f32.mrb[5].mxu0  ;;  %v1562_v17 = vmul.f32 0.6, %v706_v61  ;;  %v1566_v21 = vmul.f32 0.6, %v759_v62 }
 0x2b2   :  { %v710_v2 = vpop.f32.mrb[6].mxu1  ;;  %v763_v4 = vpop.f32.mrb[6].mxu0  ;;  %v1568_v22 = vmul.f32 0.6, %v708_v63  ;;  %v1570_v25 = vmul.f32 0.6, %v761_v0 }
 0x2b3   :  { %v794_v6 = vadd.f32 %v710_v2, %v706_v61  ;;  %v808_v7 = vadd.f32 %v763_v4, %v759_v62  ;;  %v712_v8 = vpop.f32.mrb[7].mxu1  ;;  %v765_v10 = vpop.f32.mrb[7].mxu0  ;;  %v1572_v26 = vmul.f32 0.6, %v710_v2  ;;  %v1574_v29 = vmul.f32 0.6, %v763_v4 }
 0x2b4   :  { %v801_v12 = vadd.f32 %v712_v8, %v708_v63  ;;  %v815_v13 = vadd.f32 %v765_v10, %v761_v0  ;;  %v1576_v30 = vmul.f32 0.6, %v712_v8  ;;  %v785_v37 = vmul.f32 0.6, %v765_v10 }
 0x2b5   :  { %v795_v18 = vrot.slane %v794_v6, 4  ;;  %v809_v19 = vrot.slane %v808_v7, 4 }
 0x2b6   :  { %v802_v23 = vrot.slane %v801_v12, 4  ;;  %v816_v24 = vrot.slane %v815_v13, 4 }
 0x2b7   :  { %v796_v27 = vadd.f32 %v795_v18, %v794_v6  ;;  %v810_v28 = vadd.f32 %v809_v19, %v808_v7 }
 0x2b8   :  { %v803_v31 = vadd.f32 %v802_v23, %v801_v12  ;;  %v817_v32 = vadd.f32 %v816_v24, %v815_v13  ;;  %v716_v33 = vpop.f32.mrb[8].mxu1  ;;  %v769_v34 = vpop.f32.mrb[8].mxu0 }
 0x2b9   :  { %v797_v35 = vrot.slane %v796_v27, 2  ;;  %v811_v36 = vrot.slane %v810_v28, 2  ;;  %v1578_v38 = vmul.f32 0.6, %v716_v33  ;;  %v1580_v41 = vmul.f32 0.6, %v769_v34 }
 0x2ba   :  { %v804_v39 = vrot.slane %v803_v31, 2  ;;  %v818_v40 = vrot.slane %v817_v32, 2  ;;  %v718_v42 = vpop.f32.mrb[9].mxu1  ;;  %v771_v43 = vpop.f32.mrb[9].mxu0 }
 0x2bb   :  { %v798_v45 = vadd.f32 %v797_v35, %v796_v27  ;;  %v812_v46 = vadd.f32 %v811_v36, %v810_v28  ;;  %v1584_v47 = vmul.f32 0.6, %v718_v42  ;;  %v1586_v48 = vmul.f32 0.6, %v771_v43  ;;  %v720_v49 = vpop.f32.mrb[10].mxu1  ;;  %v773_v50 = vpop.f32.mrb[10].mxu0 }
 0x2bc   :  { %v805_v51 = vadd.f32 %v804_v39, %v803_v31  ;;  %v819_v52 = vadd.f32 %v818_v40, %v817_v32  ;;  %v1588_v53 = vmul.f32 0.6, %v720_v49  ;;  %v822_v54 = vadd.f32 %v720_v49, %v716_v33  ;;  %v722_v57 = vpop.f32.mrb[11].mxu1  ;;  %v775_v58 = vpop.f32.mrb[11].mxu0 }
 0x2bd   :  { %v799_v59 = vrot.slane %v798_v45, 1  ;;  %v813_v14 = vrot.slane %v812_v46, 1  ;;  %v1590_v61 = vmul.f32 0.6, %v773_v50  ;;  %v836_v60 = vadd.f32 %v773_v50, %v769_v34 }
 0x2be   :  { %v806_v62 = vrot.slane %v805_v51, 1  ;;  %v820_v63 = vrot.slane %v819_v52, 1  ;;  %v823_v0 = vrot.slane %v822_v54, 4  ;;  %v1592_v1 = vmul.f32 0.6, %v722_v57 }
 0x2bf   :  { %v800_v2 = vadd.f32 %v799_v59, %v798_v45  ;;  %v814_v4 = vadd.f32 %v813_v14, %v812_v46  ;;  %v837_v6 = vrot.slane %v836_v60, 4  ;;  %v829_v7 = vadd.f32 %v722_v57, %v718_v42 }
 0x2c0   :  { %v807_v8 = vadd.f32 %v806_v62, %v805_v51  ;;  %v821_v10 = vadd.f32 %v820_v63, %v819_v52  ;;  %v824_v12 = vadd.f32 %v823_v0, %v822_v54  ;;  %v1594_v13 = vmul.f32 0.6, %v775_v58 }
 0x2c1   :  { %v850_v18 = vmul.f32 0.0625, %v800_v2  ;;  %v852_v19 = vmul.f32 0.0625, %v814_v4  ;;  %v838_v23 = vadd.f32 %v837_v6, %v836_v60  ;;  %v830_v24 = vrot.slane %v829_v7, 4 }
 0x2c2   :  { %v851_v27 = vmul.f32 0.0625, %v807_v8  ;;  %v853_v28 = vmul.f32 0.0625, %v821_v10  ;;  %v825_v31 = vrot.slane %v824_v12, 2  ;;  %v843_v32 = vadd.f32 %v775_v58, %v771_v43 }
 0x2c3   :  { %v858_v33 = vmul.f32 0.4, %v850_v18  ;;  %v860_v34 = vmul.f32 0.4, %v852_v19  ;;  %v839_v35 = vrot.slane %v838_v23, 2  ;;  %v831_v36 = vadd.f32 %v830_v24, %v829_v7 }
 0x2c4   :  { %v859_v39 = vmul.f32 0.4, %v851_v27  ;;  %v861_v40 = vmul.f32 0.4, %v853_v28  ;;  %v826_v42 = vadd.f32 %v825_v31, %v824_v12  ;;  %v844_v45 = vrot.slane %v843_v32, 4 }
 0x2c5   :  { %v866_v46 = vadd.f32 %v858_v33, %v1562_v17  ;;  %v870_v49 = vadd.f32 %v858_v33, %v1572_v26  ;;  %v868_v50 = vadd.f32 %v860_v34, %v1566_v21  ;;  %v872_v51 = vadd.f32 %v860_v34, %v1574_v29 }
 0x2c6   :  { %v867_v52 = vadd.f32 %v859_v39, %v1568_v22  ;;  %v871_v43 = vadd.f32 %v859_v39, %v1576_v30  ;;  %v873_v54 = vadd.f32 %v861_v40, %v785_v37  ;;  %v827_v57 = vrot.slane %v826_v42, 1 }
 0x2c7   :  { %v908_v58 = vadd.f32 %v1550_v3, %v870_v49  ;;  %v910_v59 = vadd.f32 %v1552_v5, %v872_v51  ;;  %v840_v14 = vadd.f32 %v839_v35, %v838_v23  ;;  %v832_v60 = vrot.slane %v831_v36, 2 }
 0x2c8   :  { %v909_v17 = vadd.f32 %v1554_v9, %v871_v43  ;;  %v911_v26 = vadd.f32 %v1556_v11, %v873_v54  ;;  %v828_v62 = vadd.f32 %v827_v57, %v826_v42  ;;  %v845_v21 = vadd.f32 %v844_v45, %v843_v32 }
 0x2c9   :  { %v924_v63 = vmax.f32 %v908_v58, 0.0  ;;  %v926_v29 = vmax.f32 %v910_v59, 0.0  ;;  %v841_v0 = vrot.slane %v840_v14, 1  ;;  %v833_v22 = vadd.f32 %v832_v60, %v831_v36 }
 0x2ca   :  { %v925_v2 = vmax.f32 %v909_v17, 0.0  ;;  %v854_v30 = vmul.f32 0.0625, %v828_v62  ;;  %v846_v37 = vrot.slane %v845_v21, 2  ;;  %v869_v4 = vadd.f32 %v861_v40, %v1570_v25 }
 0x2cb   :  { %v842_v6 = vadd.f32 %v841_v0, %v840_v14  ;;  %v834_v7 = vrot.slane %v833_v22, 1  ;;  %v904_v8 = vadd.f32 %v1550_v3, %v866_v46  ;;  %v905_v10 = vadd.f32 %v1554_v9, %v867_v52 }
 0x2cc   :  { %v862_v12 = vmul.f32 0.4, %v854_v30  ;;  %v847_v18 = vadd.f32 %v846_v37, %v845_v21  ;;  %v906_v19 = vadd.f32 %v1552_v5, %v868_v50  ;;  %v907_v23 = vadd.f32 %v1556_v11, %v869_v4 }
 0x2cd   :  { %v856_v24 = vmul.f32 0.0625, %v842_v6  ;;  %v835_v27 = vadd.f32 %v834_v7, %v833_v22  ;;  %v920_v28 = vmax.f32 %v904_v8, 0.0  ;;  %v921_v31 = vmax.f32 %v905_v10, 0.0 }
 0x2ce   :  { %v874_v32 = vadd.f32 %v862_v12, %v1578_v38  ;;  %v878_v25 = vadd.f32 %v862_v12, %v1588_v53  ;;  %v848_v33 = vrot.slane %v847_v18, 1  ;;  %v922_v34 = vmax.f32 %v906_v19, 0.0 }
 0x2cf   :  { %v864_v35 = vmul.f32 0.4, %v856_v24  ;;  %v855_v36 = vmul.f32 0.0625, %v835_v27  ;;  %v923_v39 = vmax.f32 %v907_v23, 0.0  ;;  %v958_v40 = vmul.f32 %v1560_v16, %v920_v28 }
 0x2d0   :  { %v912_v42 = vadd.f32 %v1550_v3, %v874_v32  ;;  %v916_v45 = vadd.f32 %v1550_v3, %v878_v25  ;;  %v849_v46 = vadd.f32 %v848_v33, %v847_v18  ;;  %v959_v49 = vmul.f32 %v1558_v15, %v921_v31 }
 0x2d1   :  { %v876_v50 = vadd.f32 %v864_v35, %v1580_v41  ;;  %v880_v38 = vadd.f32 %v864_v35, %v1590_v61  ;;  %v863_v51 = vmul.f32 0.4, %v855_v36  ;;  %v960_v53 = vmul.f32 %v1564_v20, %v922_v34  ;;  %v1130_v34 = vld [vmem:[#allocation2] ss:$0 sm:$0xff] }
 0x2d2   :  { %v932_v52 = vmax.f32 %v916_v45, 0.0  ;;  %v857_v43 = vmul.f32 0.0625, %v849_v46  ;;  %v961_v54 = vmul.f32 %v1582_v44, %v923_v39  ;;  %v974_v57 = vadd.f32 %v959_v49, %v958_v40 }
 0x2d3   :  { %v918_v58 = vadd.f32 %v1552_v5, %v880_v38  ;;  %v875_v59 = vadd.f32 %v863_v51, %v1584_v47  ;;  %v879_v3 = vadd.f32 %v863_v51, %v1592_v1  ;;  %v927_v14 = vmax.f32 %v911_v26, 0.0 }
 0x2d4   :  { %v865_v60 = vmul.f32 0.4, %v857_v43  ;;  %v975_v17 = vadd.f32 %v974_v57, %v960_v53  ;;  %v962_v41 = vmul.f32 %v1560_v16, %v924_v63  ;;  %v963_v61 = vmul.f32 %v1558_v15, %v925_v2 }
 0x2d5   :  { %v934_v62 = vmax.f32 %v918_v58, 0.0  ;;  %v913_v21 = vadd.f32 %v1554_v9, %v875_v59  ;;  %v917_v0 = vadd.f32 %v1554_v9, %v879_v3  ;;  %v964_v22 = vmul.f32 %v1564_v20, %v926_v29 }
 0x2d6   :  { %v877_v30 = vadd.f32 %v865_v60, %v1586_v48  ;;  %v881_v47 = vadd.f32 %v865_v60, %v1594_v13  ;;  %v976_v37 = vadd.f32 %v975_v17, %v961_v54  ;;  %v965_v1 = vmul.f32 %v1582_v44, %v927_v14 }
 0x2d7   :  { %v929_v26 = vmax.f32 %v913_v21, 0.0  ;;  %v933_v4 = vmax.f32 %v917_v0, 0.0  ;;  %v979_v6 = vadd.f32 %v963_v61, %v962_v41  ;;  %v914_v63 = vadd.f32 %v1552_v5, %v876_v50 }
 0x2d8   :  { %v919_v2 = vadd.f32 %v1556_v11, %v881_v47  ;;  %977 = vadd.xlane.f32.xlu1 %v976_v37  ;;  %v915_v7 = vadd.f32 %v1556_v11, %v877_v30  ;;  %v928_v9 = vmax.f32 %v912_v42, 0.0  ;;  %v970_v29 = vmul.f32 %v1560_v16, %v932_v52 }
 0x2d9   :  { %v971_v48 = vmul.f32 %v1558_v15, %v933_v4  ;;  %v980_v8 = vadd.f32 %v979_v6, %v964_v22  ;;  %v930_v13 = vmax.f32 %v914_v63, 0.0  ;;  %v967_v10 = vmul.f32 %v1558_v15, %v929_v26 }
 0x2da   :  { %v935_v12 = vmax.f32 %v919_v2, 0.0  ;;  %v931_v18 = vmax.f32 %v915_v7, 0.0  ;;  %v966_v19 = vmul.f32 %v1560_v16, %v928_v9  ;;  %v972_v5 = vmul.f32 %v1564_v20, %v934_v62 }
 0x2db   :  { %v981_v23 = vadd.f32 %v980_v8, %v965_v1  ;;  %v989_v24 = vadd.f32 %v971_v48, %v970_v29  ;;  %v968_v27 = vmul.f32 %v1564_v20, %v930_v13  ;;  %v1296_v16 = vmov 0.0  }
 0x2dc   :  { %v984_v11 = vadd.f32 %v967_v10, %v966_v19  ;;  %v973_v28 = vmul.f32 %v1582_v44, %v935_v12  ;;  %v969_v32 = vmul.f32 %v1582_v44, %v931_v18  ;;  %1032 = vst [vmem:[%s1662_s10] sm:$0x3] %v1296_v16  ;;  %v1038_v59 = vand.u32 127, %v884_v55 }
 0x2dd   :  { %982 = vadd.xlane.f32.xlu1 %v981_v23  ;;  %v990_v31 = vadd.f32 %v989_v24, %v972_v5 }
 0x2de   :  { %v985_v25 = vadd.f32 %v984_v11, %v968_v27  ;;  %v1043_v60 = vadd.s32 4294967288, %v1038_v59  ;;  %v1041_v17 = vsub.s32 %v1038_v59, %v1538_v56 }
 0x2df   :  { %v991_v33 = vadd.f32 %v990_v31, %v973_v28 }
 0x2e0   :  { %v986_v15 = vadd.f32 %v985_v25, %v969_v32  ;;  %v1046_v41 = vsub.s32 %v1043_v60, %v1538_v56 }
 0x2e1   :  { %992 = vadd.xlane.f32.xlu1 %v991_v33 }
 0x2e2   :  { %987 = vadd.xlane.f32.xlu0 %v986_v15 }
 0x2f2   :  { %1001 = vperm.xlu1 %1202, %v1130_v34  }
 0x365   :  { %v978_v20 = vpop.xlane.xlu1 %977 }
 0x36a   :  { %v983_v35 = vpop.xlane.xlu1 %982 }
 0x36e   :  { %v993_v36 = vpop.xlane.xlu1 %992 }
 0x36f   :  { %v988_v39 = vpop.xlane.xlu0 %987 }
 0x372   :  { %v1002_v40 = vpop.permute.xlu1 %1001 }
 0x373   :  { %v1004_v42 = vadd.f32 %v1002_v40, %v978_v20  ;;  %v1005_v45 = vadd.f32 %v1002_v40, %v983_v35  ;;  %v1006_v44 = vadd.f32 %v1002_v40, %v988_v39  ;;  %v1007_v46 = vadd.f32 %v1002_v40, %v993_v36 }
 0x375   :  { %v1131_v49 = vmul.f32 -1.442695, %v1004_v42  ;;  %v1132_v50 = vmul.f32 -1.442695, %v1005_v45  ;;  %v1133_v38 = vmul.f32 -1.442695, %v1006_v44 }
 0x376   :  { %v1134_v51 = vmul.f32 -1.442695, %v1007_v46 }
 0x377   :  { %1278 = vpow2.f32 %v1131_v49 }
 0x378   :  { %1280 = vpow2.f32 %v1132_v50 }
 0x379   :  { %1282 = vpow2.f32 %v1133_v38 }
 0x37a   :  { %1284 = vpow2.f32 %v1134_v51 }
 0x381   :  { %v1279_v53 = vpop.eup %1278 }
 0x382   :  { %v1281_v52 = vpop.eup %1280  ;;  %v1020_v43 = vadd.f32 1.0, %v1279_v53 }
 0x383   :  { %v1283_v54 = vpop.eup %1282  ;;  %v1021_v57 = vadd.f32 1.0, %v1281_v52 }
 0x384   :  { %v1285_v58 = vpop.eup %1284  ;;  %v1022_v3 = vadd.f32 1.0, %v1283_v54  ;;  %1286 = vrcp.f32 %v1020_v43 }
 0x385   :  { %v1023_v14 = vadd.f32 1.0, %v1285_v58  ;;  %1288 = vrcp.f32 %v1021_v57 }
 0x386   :  { %1290 = vrcp.f32 %v1022_v3 }
 0x387   :  { %1292 = vrcp.f32 %v1023_v14 }
 0x38e   :  { %v1287_v61 = vpop.eup %1286 }
 0x38f   :  { %v1289_v62 = vpop.eup %1288  ;;  %v1042_v21 = vrot.slane %v1287_v61, %v1041_v17 }
 0x390   :  { %v1291_v0 = vpop.eup %1290  ;;  %v1047_v22 = vrot.slane %v1289_v62, %v1046_v41 }
 0x391   :  { %v1293_v30 = vpop.eup %1292  ;;  %v1053_v47 = vrot.slane %v1291_v0, %v1041_v17 }
 0x392   :  { %v1049_v55 = vsel %vm1048_vm3, %v1047_v22, %v1042_v21  ;;  %v1057_v37 = vrot.slane %v1293_v30, %v1046_v41 }
 0x394   :  { %v1058_v1 = vsel %vm1048_vm3, %v1057_v37, %v1053_v47 }
 0x395   :  { %v1060_v26 = vsel %vm1059_vm4, %v1058_v1, %v1049_v55 }
 0x396   :  { %1063 = vst.msk [vmem:[%s1662_s10] sm:$0x3] %vm1062_vm5, %v1060_v26 }

</bundles_post_ra>
